<compile_context>
chip_gen: v7x
topology: tpu7x:2x2x1
jax: 0.10.0
libtpu: 0.0.40
codegen_flags: <defaults>
</compile_context>

<pallas_src>
from functools import partial

import jax
import jax.numpy as jnp
from jax.experimental import pallas as pl
from jax.experimental.pallas import tpu as pltpu


def _gce_kernel(logits_ref, targets_ref, out_ref, *, q, n_total, compute_dtype):
    core = pl.program_id(0)
    j = pl.program_id(1)
    tile_idx = core * pl.num_programs(1) + j       # logical (unclamped) row-tile index

    @pl.when(j == 0)
    def _init():
        out_ref[...] = jnp.zeros_like(out_ref)     # per-core resident partial sum

    x = logits_ref[...]                            # [TILE_N, C] native dtype
    if x.dtype != compute_dtype:
        x = x.astype(compute_dtype)
    targets = targets_ref[...]                     # [TILE_N, 1] int32
    tn, c = x.shape

    # Single lane-iota row; the broadcast to [TILE_N, C] happens inside the compare.
    class_ids = jax.lax.broadcasted_iota(jnp.int32, (1, c), 1)
    is_target = class_ids == targets               # [TILE_N, C] bool

    # Stable softmax pieces; exp is reused for both the denominator and the target pick.
    m = jnp.max(x, axis=1, keepdims=True)          # [TILE_N, 1]
    e = jnp.exp(x - m)                             # compute dtype (bf16 on v6e/v7x)
    sumexp = jnp.sum(e.astype(jnp.float32), axis=1, keepdims=True)       # f32 accum
    picked = jnp.sum(
        jnp.where(is_target, e, jnp.zeros((), e.dtype)).astype(jnp.float32),
        axis=1, keepdims=True)                                           # = e[target]

    # GCE loss per row (f32): p_t = softmax(logits)[target]
    p_t = picked / sumexp
    p_t = jnp.clip(p_t, 1e-7, 1.0 - 1e-7)
    # p_t ** q as exp(q * log(p_t)); p_t >= 1e-7 so log is safe.
    losses = (1.0 - jnp.exp(q * jnp.log(p_t))) * (1.0 / q)               # [TILE_N, 1]

    # Mask rows beyond the true batch (padded tail tile / clamped duplicate tiles).
    # Applied after all per-row math so NaN/Inf in padded rows cannot leak out.
    row_ids = tile_idx * tn + jax.lax.broadcasted_iota(jnp.int32, (tn, 1), 0)
    losses = jnp.where(row_ids < n_total, losses, 0.0)

    out_ref[...] += jnp.sum(losses)                # accumulate directly into out block


def generalized_cross_entropy_loss(logits, targets, q=0.7, *, compute_dtype=None,
                                   tile_bytes=2 << 20):
    """logits: [N, C] (f32/bf16/...), targets: [N] int, returns scalar f32 mean loss.

    compute_dtype=None keeps bf16 inputs in bf16 for elementwise math (good on
    v6e/v7x); pass jnp.float32 explicitly on v5e (no bf16 VPU/EUP).
    """
    if not 0 < q <= 1:
        raise ValueError("q should be in (0, 1]")
    n, c = logits.shape

    if compute_dtype is None:
        compute_dtype = jnp.bfloat16 if logits.dtype == jnp.bfloat16 else jnp.float32
    compute_dtype = jnp.dtype(compute_dtype)

    itemsize = jnp.dtype(logits.dtype).itemsize
    sublane = {4: 8, 2: 16, 1: 32}.get(itemsize, 8)

    # Byte-targeted row tile: big enough to amortize the ~0.35 us per-grid-step
    # overhead, small enough that double-buffered tiles + temporaries fit v7x VMEM.
    row_bytes = c * itemsize
    rows_fit = max(1, tile_bytes // row_bytes)
    if rows_fit >= n:
        tile_n = n
    else:
        tile_n = max(sublane, (rows_fit // sublane) * sublane)
        tile_n = min(tile_n, n)

    n_tiles = pl.cdiv(n, tile_n)
    num_cores = 2 if n_tiles >= 2 else 1           # v7x: split batch over the 2 TCs
    tiles_per_core = pl.cdiv(n_tiles, num_cores)

    def row_block(core, j):
        # Clamp so an out-of-range trailing tile of the last core re-reads a valid
        # tile; its rows are zeroed in-kernel by the global row-id mask.
        return jnp.minimum(core * tiles_per_core + j, n_tiles - 1)

    targets2d = targets.astype(jnp.int32).reshape(n, 1)

    # VMEM budget: 2 pipeline buffers per input + in-kernel temporaries + slack,
    # clamped to stay well inside v7x's 64 MiB physical VMEM.
    tile_logits_b = tile_n * c * itemsize
    tile_f32_b = tile_n * c * 4
    tile_tgt_b = tile_n * 128 * 4                  # lane-padded int32 targets tile
    vmem_limit = int(min(
        max(2 * tile_logits_b + 2 * tile_tgt_b + 6 * tile_f32_b + (4 << 20), 32 << 20),
        48 << 20))

    partials = pl.pallas_call(
        partial(_gce_kernel, q=float(q), n_total=n, compute_dtype=compute_dtype),
        out_shape=jax.ShapeDtypeStruct((num_cores, 1, 1), jnp.float32),
        grid_spec=pltpu.PrefetchScalarGridSpec(
            num_scalar_prefetch=0,
            grid=(num_cores, tiles_per_core),
            in_specs=[
                pl.BlockSpec((tile_n, c), lambda core, j: (row_block(core, j), 0)),
                pl.BlockSpec((tile_n, 1), lambda core, j: (row_block(core, j), 0)),
            ],
            out_specs=pl.BlockSpec((1, 1, 1), lambda core, j: (core, 0, 0)),
        ),
        compiler_params=pltpu.CompilerParams(
            dimension_semantics=("parallel", "arbitrary"),
            vmem_limit_bytes=vmem_limit,
        ),
    )(logits, targets2d)                           # native dtype DMA'd; cast in-kernel

    return jnp.sum(partials) / n


def _reference(logits, targets, q):
    # pure-JAX reference matching PyTorch GeneralizedCrossEntropyLoss.forward
    probs = jax.nn.softmax(logits.astype(jnp.float32), axis=1)
    tp = jnp.take_along_axis(probs, targets[:, None].astype(jnp.int32), axis=1)[:, 0]
    tp = jnp.clip(tp, 1e-7, 1.0 - 1e-7)
    return jnp.mean((1.0 - tp ** q) / q)


if __name__ == "__main__":
    key = jax.random.PRNGKey(0)
    q = 0.7
    k1, k2, k3, k4 = jax.random.split(key, 4)

    # Case 1: small single-tile f32 input.
    n1, c1 = 8, 128
    logits1 = jax.random.normal(k1, (n1, c1), dtype=jnp.float32)
    targets1 = jax.random.randint(k2, (n1,), 0, c1, dtype=jnp.int32)
    out1 = jax.block_until_ready(generalized_cross_entropy_loss(logits1, targets1, q))
    ref1 = jax.block_until_ready(_reference(logits1, targets1, q))
    assert jnp.allclose(out1, ref1, rtol=1e-5, atol=1e-5), (out1, ref1)

    # Case 2: multi-tile grid with ragged tail + 2-way core split (tiny byte budget
    # just to exercise the pipelined / parallel path at small shapes).
    n2, c2 = 200, 128
    logits2 = jax.random.normal(k3, (n2, c2), dtype=jnp.float32)
    targets2 = jax.random.randint(k4, (n2,), 0, c2, dtype=jnp.int32)
    out2 = jax.block_until_ready(
        generalized_cross_entropy_loss(logits2, targets2, q, tile_bytes=32 * 1024))
    ref2 = jax.block_until_ready(_reference(logits2, targets2, q))
    assert jnp.allclose(out2, ref2, rtol=1e-5, atol=1e-5), (out2, ref2)

    # Case 3: bf16 inputs take the bf16 compute path (f32 accumulation); looser tol.
    logits3 = logits2.astype(jnp.bfloat16)
    out3 = jax.block_until_ready(
        generalized_cross_entropy_loss(logits3, targets2, q, tile_bytes=32 * 1024))
    ref3 = jax.block_until_ready(_reference(logits3, targets2, q))
    assert jnp.allclose(out3, ref3, rtol=5e-2, atol=5e-2), (out3, ref3)

    print("KERNEL_OK")
</pallas_src>

<mosaic_0001>
module attributes {stable_mosaic.version = 11 : i64} {
  func.func @_gce_kernel(%arg0: i32, %arg1: i32, %arg2: memref<8x128xf32, #tpu.memory_space<vmem>>, %arg3: memref<8x1xi32, #tpu.memory_space<vmem>>, %arg4: memref<1x1x1xf32, #tpu.memory_space<vmem>>) attributes {dimension_semantics = [#tpu.dimension_semantics<parallel>, #tpu.dimension_semantics<arbitrary>], iteration_bounds = array<i64: 1, 1>, scalar_prefetch = 0 : i64, scratch_operands = 0 : i64, tpu.core_type = #tpu.core_type<tc>, window_params = [{transform_indices = @transform_0, window_bounds = array<i64: 8, 128>}, {transform_indices = @transform_1, window_bounds = array<i64: 8, 1>}, {transform_indices = @transform_2, window_bounds = array<i64: 1, 1, 1>}]} {
    %c1_i32 = arith.constant 1 : i32
    %0 = arith.muli %arg0, %c1_i32 : i32
    %1 = arith.addi %0, %arg1 : i32
    %c0_i32 = arith.constant 0 : i32
    %2 = arith.cmpi eq, %arg1, %c0_i32 : i32
    %3 = arith.extui %2 : i1 to i32
    %c0_i32_0 = arith.constant 0 : i32
    %4 = arith.cmpi ne, %3, %c0_i32_0 : i32
    scf.if %4 {
      %cst_21 = arith.constant 0.000000e+00 : f32
      %51 = vector.broadcast %cst_21 : f32 to vector<1x1x1xf32>
      %c0_22 = arith.constant 0 : index
      %c0_23 = arith.constant 0 : index
      %c0_24 = arith.constant 0 : index
      %52 = vector.load %arg4[%c0_22, %c0_23, %c0_24] : memref<1x1x1xf32, #tpu.memory_space<vmem>>, vector<1x1x1xf32>
      tpu.vector_store %arg4[%c0_22, %c0_23, %c0_24], %51 {strides = array<i32>} : memref<1x1x1xf32, #tpu.memory_space<vmem>>, vector<1x1x1xf32>,
    } else {
    }
    %c0 = arith.constant 0 : index
    %c0_1 = arith.constant 0 : index
    %5 = vector.load %arg2[%c0, %c0_1] : memref<8x128xf32, #tpu.memory_space<vmem>>, vector<8x128xf32>
    %c0_2 = arith.constant 0 : index
    %c0_3 = arith.constant 0 : index
    %6 = vector.load %arg3[%c0_2, %c0_3] : memref<8x1xi32, #tpu.memory_space<vmem>>, vector<8x1xi32>
    %7 = tpu.iota {dimensions = array<i32: 1>} : vector<1x128xi32>
    %8 = vector.broadcast %7 : vector<1x128xi32> to vector<8x128xi32>
    %9 = vector.broadcast %6 : vector<8x1xi32> to vector<8x128xi32>
    %10 = arith.cmpi eq, %8, %9 : vector<8x128xi32>
    %cst = arith.constant dense<0xFF800000> : vector<8xf32>
    %11 = vector.multi_reduction <maximumf>, %5, %cst [1] : vector<8x128xf32> to vector<8xf32>
    %12 = vector.shape_cast %11 : vector<8xf32> to vector<8x1xf32>
    %13 = vector.broadcast %12 : vector<8x1xf32> to vector<8x128xf32>
    %14 = arith.subf %5, %13 : vector<8x128xf32>
    %15 = math.exp %14 : vector<8x128xf32>
    %cst_4 = arith.constant dense<0.000000e+00> : vector<8xf32>
    %16 = vector.multi_reduction <add>, %15, %cst_4 [1] : vector<8x128xf32> to vector<8xf32>
    %17 = vector.shape_cast %16 : vector<8xf32> to vector<8x1xf32>
    %cst_5 = arith.constant 0.000000e+00 : f32
    %18 = vector.broadcast %cst_5 : f32 to vector<8x128xf32>
    %19 = arith.select %10, %15, %18 : vector<8x128xi1>, vector<8x128xf32>
    %cst_6 = arith.constant dense<0.000000e+00> : vector<8xf32>
    %20 = vector.multi_reduction <add>, %19, %cst_6 [1] : vector<8x128xf32> to vector<8xf32>
    %21 = vector.shape_cast %20 : vector<8xf32> to vector<8x1xf32>
    %22 = arith.divf %21, %17 : vector<8x1xf32>
    %cst_7 = arith.constant 1.000000e-07 : f32
    %cst_8 = arith.constant 0.99999988 : f32
    %23 = vector.broadcast %cst_7 : f32 to vector<8x1xf32>
    %24 = arith.maximumf %23, %22 : vector<8x1xf32>
    %25 = vector.broadcast %cst_8 : f32 to vector<8x1xf32>
    %26 = arith.minimumf %25, %24 : vector<8x1xf32>
    %27 = math.log %26 : vector<8x1xf32>
    %cst_9 = arith.constant 0.699999988 : f32
    %28 = vector.broadcast %cst_9 : f32 to vector<8x1xf32>
    %29 = arith.mulf %28, %27 : vector<8x1xf32>
    %30 = math.exp %29 : vector<8x1xf32>
    %cst_10 = arith.constant 1.000000e+00 : f32
    %31 = vector.broadcast %cst_10 : f32 to vector<8x1xf32>
    %32 = arith.subf %31, %30 : vector<8x1xf32>
    %cst_11 = arith.constant 1.42857146 : f32
    %33 = vector.broadcast %cst_11 : f32 to vector<8x1xf32>
    %34 = arith.mulf %32, %33 : vector<8x1xf32>
    %c8_i32 = arith.constant 8 : i32
    %35 = arith.muli %1, %c8_i32 : i32
    %36 = tpu.iota {dimensions = array<i32: 0>} : vector<8x1xi32>
    %37 = vector.broadcast %35 : i32 to vector<8x1xi32>
    %38 = arith.addi %37, %36 : vector<8x1xi32>
    %c8_i32_12 = arith.constant 8 : i32
    %39 = vector.broadcast %c8_i32_12 : i32 to vector<8x1xi32>
    %40 = arith.cmpi slt, %38, %39 : vector<8x1xi32>
    %cst_13 = arith.constant 0.000000e+00 : f32
    %41 = vector.broadcast %cst_13 : f32 to vector<8x1xf32>
    %42 = arith.select %40, %34, %41 : vector<8x1xi1>, vector<8x1xf32>
    %c0_14 = arith.constant 0 : index
    %c0_15 = arith.constant 0 : index
    %c0_16 = arith.constant 0 : index
    %43 = vector.load %arg4[%c0_14, %c0_15, %c0_16] : memref<1x1x1xf32, #tpu.memory_space<vmem>>, vector<1x1x1xf32>
    %44 = vector.shape_cast %42 : vector<8x1xf32> to vector<1x8x1xf32>
    %cst_17 = arith.constant dense<0.000000e+00> : vector<1xf32>
    %45 = vector.multi_reduction <add>, %44, %cst_17 [1, 2] : vector<1x8x1xf32> to vector<1xf32>
    %46 = vector.shape_cast %45 : vector<1xf32> to vector<1x1x1xf32>
    %47 = vector.extract %46[0, 0, 0] : f32 from vector<1x1x1xf32>
    %48 = vector.broadcast %47 : f32 to vector<1x1x1xf32>
    %49 = arith.addf %43, %48 : vector<1x1x1xf32>
    %c0_18 = arith.constant 0 : index
    %c0_19 = arith.constant 0 : index
    %c0_20 = arith.constant 0 : index
    %50 = vector.load %arg4[%c0_18, %c0_19, %c0_20] : memref<1x1x1xf32, #tpu.memory_space<vmem>>, vector<1x1x1xf32>
    tpu.vector_store %arg4[%c0_18, %c0_19, %c0_20], %49 {strides = array<i32>} : memref<1x1x1xf32, #tpu.memory_space<vmem>>, vector<1x1x1xf32>,
    return
  }
  func.func @transform_0(%arg0: i32, %arg1: i32) -> (i32, i32) {
    %c1_i32 = arith.constant 1 : i32
    %0 = arith.muli %arg0, %c1_i32 : i32
    %1 = arith.addi %0, %arg1 : i32
    %c0_i32 = arith.constant 0 : i32
    %2 = arith.minsi %1, %c0_i32 : i32
    %c0_i32_0 = arith.constant 0 : i32
    %c0_i32_1 = arith.constant 0 : i32
    return %2, %c0_i32_0 : i32, i32
  }
  func.func @transform_1(%arg0: i32, %arg1: i32) -> (i32, i32) {
    %c1_i32 = arith.constant 1 : i32
    %0 = arith.muli %arg0, %c1_i32 : i32
    %1 = arith.addi %0, %arg1 : i32
    %c0_i32 = arith.constant 0 : i32
    %2 = arith.minsi %1, %c0_i32 : i32
    %c0_i32_0 = arith.constant 0 : i32
    %c0_i32_1 = arith.constant 0 : i32
    return %2, %c0_i32_0 : i32, i32
  }
  func.func @transform_2(%arg0: i32, %arg1: i32) -> (i32, i32, i32) {
    %c0_i32 = arith.constant 0 : i32
    %c0_i32_0 = arith.constant 0 : i32
    %c0_i32_1 = arith.constant 0 : i32
    return %arg0, %c0_i32, %c0_i32_0 : i32, i32, i32
  }
}

</mosaic_0001>

<bundles_post_ra>
// kernel: tpu_custom_call.1
= control target key start
LH: loop header
LB: loop body
LE: loop exit
PB: predicated region body
PF: predicated region fallthrough
CT: control target
= control target key end

     0   :  { %s227_s0 = inlined_call_operand.vmem [shape: f32[8,128], index: 0, kind: input, shape index: {}]   ;;  %s228_s1 = inlined_call_operand.vmem [shape: s32[8,1], index: 1, kind: input, shape index: {}]   ;;  %s229_s2 = inlined_call_operand.hbm [shape: f32[1,1,1], index: 2, kind: output, shape index: {}]  }
   0x1   :  { %v73_v0 = vld [vmem:[%s227_s0] sm:$0xff] }
   0x2   :  { %7 = vsyncpa [#allocation3], 0  ;;  %81 = vmax.xlane.f32.xlu0 %v73_v0  ;;  %v189_v1 = vmov 0   ;;  %v74_v2 = vld [vmem:[%s228_s1] sm:$0xff]  ;;  %v75_v6 = vlaneseq  ;;  %vm110_vm1 = vcmask 7168   ;;  %vm71_vm2 = vcmask 0  }
   0x3   :  { %156 = vset.pattern.permute.xlu0 %v189_v1  ;;  %v190_v25 = vmov 0.0   ;;  %s191_s0 = smov [#allocation2]  }
   0x4   :  { %v76_v7 = vand.u32 127, %v75_v6  ;;  %72 = vst.msk [vmem:[#allocation2] sm:$0x1] %vm71_vm2, %v190_v25  ;;  %s131_s1 = sshll.u32 %s191_s0, 4  ;;  %s132_s1 = int_to_ptr.vmem [resolvable:$true] %s131_s1 }
   0x5   :  { %s165_s14 = scalar_lea.vmem %s132_s1, 16  ;;  %s169_s15 = scalar_lea.vmem %s132_s1, 32 }
   0x6   :  { %p166_p0 = scmp.ne.s32.totalorder %s132_s1, %s165_s14  ;;  %p170_p1 = scmp.lt.s32.totalorder %s132_s1, %s132_s1 }
   0x7   :  { %p171_p2 = scmp.lt.s32.totalorder %s169_s15, %s165_s14 }
   0x9   :  { %p172_p3 = por %p171_p2, %p170_p1 }
   0xb   :  { %v109_v33 = vld [vmem:[#allocation2] sm:$0x1]  ;;  %p173_p4 = pnand %p172_p3, %p166_p0 }
  0x18   :  { %78 = vperm.xlu0 %156, %v74_v2  }
  0x8f   :  { %v82_v3 = vpop.xlane.xlu0 %81 }
  0x90   :  { %v83_v4 = vsub.f32 %v73_v0, %v82_v3 }
  0x92   :  { %v84_v5 = vmul.f32 1.442695, %v83_v4 }
  0x94   :  { %157 = vpow2.f32 %v84_v5 }
  0x97   :  { %v79_v8 = vpop.permute.xlu0 %78 }
  0x98   :  { %vm80_vm0 = vcmp.eq.s32.totalorder %v76_v7, %v79_v8 }
  0x9e   :  { %v158_v9 = vpop.eup %157 }
  0x9f   :  { %86 = vadd.xlane.f32.xlu1 %v158_v9  ;;  %v88_v10 = vsel %vm80_vm0, %v158_v9, 0.0 }
  0xa3   :  { %89 = vadd.xlane.f32.xlu1 %v88_v10 }
 0x12c   :  { %v87_v11 = vpop.xlane.xlu1 %86 }
 0x12d   :  { %159 = vrcp.f32 %v87_v11 }
 0x130   :  { %v90_v13 = vpop.xlane.xlu1 %89 }
 0x137   :  { %v160_v12 = vpop.eup %159 }
 0x138   :  { %v92_v14 = vmul.f32 %v160_v12, %v90_v13 }
 0x13a   :  { %v93_v15 = vmax.f32 %v92_v14, 1e-07 }
 0x13c   :  { %v94_v16 = vmin.f32 %v93_v15, 0.9999999 }
 0x13e   :  { %161 = vlog2.f32 %v94_v16 }
 0x148   :  { %v162_v17 = vpop.eup %161 }
 0x149   :  { %v96_v18 = vmul.f32 0.6931472, %v162_v17 }
 0x14b   :  { %v97_v19 = vmul.f32 0.7, %v96_v18 }
 0x14d   :  { %v98_v20 = vmul.f32 1.442695, %v97_v19 }
 0x14f   :  { %163 = vpow2.f32 %v98_v20 }
 0x159   :  { %v164_v21 = vpop.eup %163 }
 0x15a   :  { %v100_v22 = vsub.f32 1.0, %v164_v21 }
 0x15c   :  { %v101_v23 = vmul.f32 1.4285715, %v100_v22 }
 0x15e   :  { %v111_v24 = vsel %vm110_vm1, %v101_v23, 0.0 }
 0x15f   :  { %112 = vadd.xlane.f32.xlu1 %v111_v24 }
 0x1ec   :  { %v113_v26 = vpop.xlane.xlu1 %112 }
 0x1ed   :  { %v114_v27 = vrot.slane %v113_v26, 4 }
 0x1ef   :  { %v115_v28 = vadd.f32 %v114_v27, %v113_v26 }
 0x1f1   :  { %v116_v29 = vrot.slane %v115_v28, 2 }
 0x1f3   :  { %v117_v30 = vadd.f32 %v116_v29, %v115_v28 }
 0x1f5   :  { %v118_v31 = vrot.slane %v117_v30, 1 }
 0x1f7   :  { %v119_v32 = vadd.f32 %v118_v31, %v117_v30 }
 0x1f9   :  { %151 = vpush %v119_v32 }
 0x22a   :  { %s152_s13 = spop %151 }
 0x22b   :  { %v121_v34 = vstv %s152_s13 }
 0x22c   :  { %v122_v35 = vadd.f32 %v121_v34, %v109_v33 }
 0x22e   :  { %124 = vst.msk [vmem:[#allocation2] sm:$0x1] %vm71_vm2, %v122_v35 }
 0x22f   :  { %176 = shalt.err (!%p173_p4)
}
 0x230   :  { %s177_s18 = scalar_lea.hbm %s229_s2, 16 }
 0x231   :  { %p178_p5 = scmp.ne.s32.totalorder %s229_s2, %s177_s18  ;;  %p181_p6 = scmp.lt.u32.totalorder %s177_s18, %s229_s2 }
 0x233   :  { %p183_p7 = pnand %p181_p6, %p178_p5 }
 0x235   :  { %186 = shalt.err (!%p183_p7)
}
 0x236   :  { %134 = dma.vmem_to_hbm [thread:$0]  %s132_s1, 16, %s229_s2, [#allocation3]  }
 0x237   :  { %187 = dma.done.wait [#allocation3], 16  }
 0x238   :  { %188 = vsyncadd [#allocation3], 4294967280 }
 0x239   :  { %138 = vsyncpa [#allocation3], 1 }

</bundles_post_ra>
